<compile_context>
chip_gen: v7x
topology: tpu7x:2x2x1
jax: 0.10.0
libtpu: 0.0.40
codegen_flags: <defaults>
</compile_context>

<pallas_src>
import functools

import jax
import jax.numpy as jnp
from jax.experimental import pallas as pl
from jax.experimental.pallas import tpu as pltpu

BN_EPS = 1e-5
C_IN = 64  # channel dim fixed by the module (Linear(64, ...))


def _make_kernel(N, TN, n_blocks):
    needs_mask = (N % TN) != 0
    inv_n = 1.0 / float(N)

    def kernel(src_ref, tgt_ref, w_ref, p_ref, out_ref, acc_ref):
        n = pl.program_id(0)

        # ---- init accumulator ----------------------------------------------
        @pl.when(n == 0)
        def _():
            acc_ref[...] = jnp.zeros_like(acc_ref)

        # ---- streamed partial reduction over the N axis ---------------------
        d = src_ref[...].astype(jnp.float32) - tgt_ref[...].astype(jnp.float32)
        if needs_mask:
            lane = jax.lax.broadcasted_iota(jnp.int32, d.shape, 2) + n * TN
            d = jnp.where(lane < N, d, 0.0)
        acc_ref[...] += jnp.sum(d, axis=2)  # (B, 64)

        # ---- MLP epilogue on the last grid step ------------------------------
        @pl.when(n == n_blocks - 1)
        def _():
            residual = jnp.abs(acc_ref[...]) * inv_n  # (B, 64)

            # unpack parameter slabs (static slices)
            w1 = w_ref[0:64, :]          # (64, 64)
            w2 = w_ref[64:128, 0:16]     # (64, 16)
            b1 = p_ref[0:1, :]           # (1, 64)
            g1 = p_ref[1:2, :]
            be1 = p_ref[2:3, :]
            b2 = p_ref[3:4, 0:16]        # (1, 16)
            g2 = p_ref[4:5, 0:16]
            be2 = p_ref[5:6, 0:16]
            w3 = p_ref[6:7, 0:16]        # (1, 16)
            b3 = p_ref[7:8, 0:1]         # (1, 1)

            def bn_relu(h, gamma, beta):
                # training-mode BatchNorm1d: biased batch stats over batch axis
                mu = jnp.mean(h, axis=0, keepdims=True)
                var = jnp.mean((h - mu) * (h - mu), axis=0, keepdims=True)
                h = (h - mu) * jax.lax.rsqrt(var + BN_EPS) * gamma + beta
                return jnp.maximum(h, 0.0)

            h = jnp.dot(residual, w1, preferred_element_type=jnp.float32) + b1
            h = bn_relu(h, g1, be1)                    # (B, 64)
            h = jnp.dot(h, w2, preferred_element_type=jnp.float32) + b2
            h = bn_relu(h, g2, be2)                    # (B, 16)

            # (B,16)@(16,1) done on the VPU (mul) + XLU (lane reduce) instead
            # of a degenerate 1-column MXU pass.
            y = jnp.sum(h * w3, axis=-1, keepdims=True) + b3
            y = jnp.maximum(y, 0.0)
            out_ref[...] = jnp.clip(y, 1.0 / 20.0, 20.0)  # (B, 1)

    return kernel


def _choose_tn(N, B, elem_bytes=4):
    """Pick an N-tile: 2 inputs x 2 pipeline buffers x B*64*TN*elem_bytes
    kept under ~8 MiB so it fits the smallest scoped-VMEM defaults
    (v5e: 16 MiB, v7x: 32 MiB) with headroom."""
    budget = 8 * 1024 * 1024
    per_col = 2 * 2 * B * C_IN * elem_bytes
    max_tn = max(128, budget // max(per_col, 1))
    max_tn = min(max_tn, 4096)
    if N <= max_tn:
        return N                      # full-extent block (no (8,128) issue)
    return max(128, (max_tn // 128) * 128)  # lane-aligned tile, last block masked


def temperature_net(src, tgt, w_slab, p_slab, tn=None):
    """src, tgt: (B, 64, N) f32 or bf16.  w_slab: (128, 64), p_slab: (8, 64)."""
    B, C, N = src.shape
    assert C == C_IN, f"expected channel dim {C_IN}, got {C}"
    if tn is None:
        tn = _choose_tn(N, B, jnp.dtype(src.dtype).itemsize)
    assert tn == N or tn % 128 == 0, "TN must equal N or be a multiple of 128"
    n_blocks = -(-N // tn)

    kernel = _make_kernel(N=N, TN=tn, n_blocks=n_blocks)

    return pl.pallas_call(
        kernel,
        out_shape=jax.ShapeDtypeStruct((B, 1), jnp.float32),
        grid=(n_blocks,),
        in_specs=[
            pl.BlockSpec((B, C_IN, tn), lambda n: (0, 0, n)),   # src: streamed
            pl.BlockSpec((B, C_IN, tn), lambda n: (0, 0, n)),   # tgt: streamed
            pl.BlockSpec((128, 64), lambda n: (0, 0)),          # weights: resident
            pl.BlockSpec((8, 64), lambda n: (0, 0)),            # vec params: resident
        ],
        out_specs=pl.BlockSpec((B, 1), lambda n: (0, 0)),
        scratch_shapes=[pltpu.VMEM((B, C_IN), jnp.float32)],    # running sum acc
        compiler_params=pltpu.CompilerParams(
            dimension_semantics=("arbitrary",),                 # reduction axis
        ),
    )(src, tgt, w_slab, p_slab)


def init_params(key):
    """Deterministic parameter init mimicking PyTorch defaults.

    Linear weights are stored transposed (in_features, out_features) so the
    kernel can do x @ W directly.  BatchNorm gamma ~ 1, beta ~ 0 (slightly
    perturbed so they are exercised)."""
    keys = jax.random.split(key, 8)

    def linear(kw, kb, fan_in, fan_out):
        bound = 1.0 / jnp.sqrt(fan_in)
        w = jax.random.uniform(kw, (fan_in, fan_out), jnp.float32, -bound, bound)
        b = jax.random.uniform(kb, (1, fan_out), jnp.float32, -bound, bound)
        return w, b

    w1, b1 = linear(keys[0], keys[1], 64, 64)
    w2, b2 = linear(keys[2], keys[3], 64, 16)
    w3, b3 = linear(keys[4], keys[5], 16, 1)

    g1 = 1.0 + 0.01 * jax.random.normal(keys[6], (1, 64), jnp.float32)
    be1 = 0.01 * jax.random.normal(keys[7], (1, 64), jnp.float32)
    g2 = jnp.ones((1, 16), jnp.float32)
    be2 = jnp.zeros((1, 16), jnp.float32)

    return (w1, b1, g1, be1, w2, b2, g2, be2, w3, b3)


def pack_params(params):
    """Pack the 10 small parameter arrays into two lane-dense slabs."""
    (w1, b1, g1, be1, w2, b2, g2, be2, w3, b3) = params

    w2_pad = jnp.zeros((64, 64), jnp.float32).at[:, :16].set(w2)
    w_slab = jnp.concatenate([w1, w2_pad], axis=0)          # (128, 64)

    def row64(v):
        v = v.reshape(1, -1).astype(jnp.float32)
        return jnp.zeros((1, 64), jnp.float32).at[:, : v.shape[1]].set(v)

    p_slab = jnp.concatenate(
        [row64(b1), row64(g1), row64(be1),
         row64(b2), row64(g2), row64(be2),
         row64(w3), row64(b3)],
        axis=0,
    )                                                        # (8, 64)
    return w_slab, p_slab


def reference(src, tgt, params):
    """Plain-JAX reference of the same forward pass (for verification)."""
    (w1, b1, g1, be1, w2, b2, g2, be2, w3, b3) = params
    r = jnp.abs(jnp.mean(src.astype(jnp.float32), axis=2)
                - jnp.mean(tgt.astype(jnp.float32), axis=2))

    def bn_relu(h, g, b):
        mu = jnp.mean(h, axis=0, keepdims=True)
        var = jnp.mean((h - mu) ** 2, axis=0, keepdims=True)
        return jnp.maximum((h - mu) / jnp.sqrt(var + BN_EPS) * g + b, 0.0)

    h = bn_relu(r @ w1 + b1, g1, be1)
    h = bn_relu(h @ w2 + b2, g2, be2)
    y = jnp.maximum(h @ w3 + b3, 0.0)
    return jnp.clip(y, 1.0 / 20.0, 20.0)


if __name__ == "__main__":
    key = jax.random.PRNGKey(0)
    k_src, k_tgt, k_par, k_src2, k_tgt2 = jax.random.split(key, 5)
    params = init_params(k_par)
    w_slab, p_slab = pack_params(params)

    # --- small shape consistent with the module (single-block path) ----------
    B, C, N = 8, 64, 16
    src = jax.random.normal(k_src, (B, C, N), jnp.float32)
    tgt = jax.random.normal(k_tgt, (B, C, N), jnp.float32)

    out = jax.block_until_ready(temperature_net(src, tgt, w_slab, p_slab))
    ref = reference(src, tgt, params)
    assert out.shape == (B, 1)
    assert jnp.allclose(out, ref, atol=1e-4, rtol=1e-4), (out, ref)

    # --- multi-block tiled + masked-partial-block path (N not /128) ----------
    N2 = 300
    src2 = jax.random.normal(k_src2, (B, C, N2), jnp.float32)
    tgt2 = jax.random.normal(k_tgt2, (B, C, N2), jnp.float32)

    out2 = jax.block_until_ready(
        temperature_net(src2, tgt2, w_slab, p_slab, tn=128))
    ref2 = reference(src2, tgt2, params)
    assert out2.shape == (B, 1)
    assert jnp.allclose(out2, ref2, atol=1e-4, rtol=1e-4), (out2, ref2)

    print("KERNEL_OK")
</pallas_src>

<mosaic_0001>
module attributes {stable_mosaic.version = 11 : i64} {
  func.func @kernel(%arg0: i32, %arg1: memref<8x64x16xf32, #tpu.memory_space<vmem>>, %arg2: memref<8x64x16xf32, #tpu.memory_space<vmem>>, %arg3: memref<128x64xf32, #tpu.memory_space<vmem>>, %arg4: memref<8x64xf32, #tpu.memory_space<vmem>>, %arg5: memref<8x1xf32, #tpu.memory_space<vmem>>, %arg6: memref<8x64xf32, #tpu.memory_space<vmem>>) attributes {dimension_semantics = [#tpu.dimension_semantics<arbitrary>], iteration_bounds = array<i64: 1>, scalar_prefetch = 0 : i64, scratch_operands = 1 : i64, tpu.core_type = #tpu.core_type<tc>, window_params = [{transform_indices = @transform_0, window_bounds = array<i64: 8, 64, 16>}, {transform_indices = @transform_1, window_bounds = array<i64: 8, 64, 16>}, {pipeline_mode = #tpu.pipeline_mode<synchronous>, transform_indices = @transform_2, window_bounds = array<i64: 128, 64>}, {pipeline_mode = #tpu.pipeline_mode<synchronous>, transform_indices = @transform_3, window_bounds = array<i64: 8, 64>}, {pipeline_mode = #tpu.pipeline_mode<synchronous>, transform_indices = @transform_4, window_bounds = array<i64: 8, 1>}]} {
    %c0_i32 = arith.constant 0 : i32
    %0 = arith.cmpi eq, %arg0, %c0_i32 : i32
    %1 = arith.extui %0 : i1 to i32
    %c0_i32_0 = arith.constant 0 : i32
    %2 = arith.cmpi ne, %1, %c0_i32_0 : i32
    scf.if %2 {
      %cst_12 = arith.constant 0.000000e+00 : f32
      %13 = vector.broadcast %cst_12 : f32 to vector<8x64xf32>
      %c0_13 = arith.constant 0 : index
      %c0_14 = arith.constant 0 : index
      %14 = vector.load %arg6[%c0_13, %c0_14] : memref<8x64xf32, #tpu.memory_space<vmem>>, vector<8x64xf32>
      tpu.vector_store %arg6[%c0_13, %c0_14], %13 {strides = array<i32>} : memref<8x64xf32, #tpu.memory_space<vmem>>, vector<8x64xf32>,
    } else {
    }
    %c0 = arith.constant 0 : index
    %c0_1 = arith.constant 0 : index
    %c0_2 = arith.constant 0 : index
    %3 = vector.load %arg1[%c0, %c0_1, %c0_2] : memref<8x64x16xf32, #tpu.memory_space<vmem>>, vector<8x64x16xf32>
    %c0_3 = arith.constant 0 : index
    %c0_4 = arith.constant 0 : index
    %c0_5 = arith.constant 0 : index
    %4 = vector.load %arg2[%c0_3, %c0_4, %c0_5] : memref<8x64x16xf32, #tpu.memory_space<vmem>>, vector<8x64x16xf32>
    %5 = arith.subf %3, %4 : vector<8x64x16xf32>
    %c0_6 = arith.constant 0 : index
    %c0_7 = arith.constant 0 : index
    %6 = vector.load %arg6[%c0_6, %c0_7] : memref<8x64xf32, #tpu.memory_space<vmem>>, vector<8x64xf32>
    %cst = arith.constant dense<0.000000e+00> : vector<8x64xf32>
    %7 = vector.multi_reduction <add>, %5, %cst [2] : vector<8x64x16xf32> to vector<8x64xf32>
    %8 = arith.addf %6, %7 : vector<8x64xf32>
    %c0_8 = arith.constant 0 : index
    %c0_9 = arith.constant 0 : index
    %9 = vector.load %arg6[%c0_8, %c0_9] : memref<8x64xf32, #tpu.memory_space<vmem>>, vector<8x64xf32>
    tpu.vector_store %arg6[%c0_8, %c0_9], %8 {strides = array<i32>} : memref<8x64xf32, #tpu.memory_space<vmem>>, vector<8x64xf32>,
    %c0_i32_10 = arith.constant 0 : i32
    %10 = arith.cmpi eq, %arg0, %c0_i32_10 : i32
    %11 = arith.extui %10 : i1 to i32
    %c0_i32_11 = arith.constant 0 : i32
    %12 = arith.cmpi ne, %11, %c0_i32_11 : i32
    scf.if %12 {
      %c0_12 = arith.constant 0 : index
      %c0_13 = arith.constant 0 : index
      %13 = vector.load %arg6[%c0_12, %c0_13] : memref<8x64xf32, #tpu.memory_space<vmem>>, vector<8x64xf32>
      %14 = math.absf %13 : vector<8x64xf32>
      %cst_14 = arith.constant 6.250000e-02 : f32
      %15 = vector.broadcast %cst_14 : f32 to vector<8x64xf32>
      %16 = arith.mulf %14, %15 : vector<8x64xf32>
      %c0_15 = arith.constant 0 : index
      %c0_16 = arith.constant 0 : index
      %17 = vector.load %arg3[%c0_15, %c0_16] : memref<128x64xf32, #tpu.memory_space<vmem>>, vector<64x64xf32>
      %c64 = arith.constant 64 : index
      %c0_17 = arith.constant 0 : index
      %18 = vector.load %arg3[%c64, %c0_17] : memref<128x64xf32, #tpu.memory_space<vmem>>, vector<64x16xf32>
      %c0_18 = arith.constant 0 : index
      %c0_19 = arith.constant 0 : index
      %19 = vector.load %arg4[%c0_18, %c0_19] : memref<8x64xf32, #tpu.memory_space<vmem>>, vector<1x64xf32>
      %c1 = arith.constant 1 : index
      %c0_20 = arith.constant 0 : index
      %20 = vector.load %arg4[%c1, %c0_20] : memref<8x64xf32, #tpu.memory_space<vmem>>, vector<1x64xf32>
      %c2 = arith.constant 2 : index
      %c0_21 = arith.constant 0 : index
      %21 = vector.load %arg4[%c2, %c0_21] : memref<8x64xf32, #tpu.memory_space<vmem>>, vector<1x64xf32>
      %c3 = arith.constant 3 : index
      %c0_22 = arith.constant 0 : index
      %22 = vector.load %arg4[%c3, %c0_22] : memref<8x64xf32, #tpu.memory_space<vmem>>, vector<1x16xf32>
      %c4 = arith.constant 4 : index
      %c0_23 = arith.constant 0 : index
      %23 = vector.load %arg4[%c4, %c0_23] : memref<8x64xf32, #tpu.memory_space<vmem>>, vector<1x16xf32>
      %c5 = arith.constant 5 : index
      %c0_24 = arith.constant 0 : index
      %24 = vector.load %arg4[%c5, %c0_24] : memref<8x64xf32, #tpu.memory_space<vmem>>, vector<1x16xf32>
      %c6 = arith.constant 6 : index
      %c0_25 = arith.constant 0 : index
      %25 = vector.load %arg4[%c6, %c0_25] : memref<8x64xf32, #tpu.memory_space<vmem>>, vector<1x16xf32>
      %c7 = arith.constant 7 : index
      %c0_26 = arith.constant 0 : index
      %26 = vector.load %arg4[%c7, %c0_26] : memref<8x64xf32, #tpu.memory_space<vmem>>, vector<1x1xf32>
      %cst_27 = arith.constant dense<0.000000e+00> : vector<8x64xf32>
      %27 = tpu.matmul %16, %17, %cst_27 {dimension_numbers = #tpu.dot_dimension_numbers<[1], [0], [0], [1], [0, 0, 1, 1], [], []>} : vector<8x64xf32>, vector<64x64xf32>, vector<8x64xf32> -> vector<8x64xf32>
      %28 = vector.broadcast %19 : vector<1x64xf32> to vector<8x64xf32>
      %29 = arith.addf %27, %28 : vector<8x64xf32>
      %cst_28 = arith.constant dense<0.000000e+00> : vector<64xf32>
      %30 = vector.multi_reduction <add>, %29, %cst_28 [0] : vector<8x64xf32> to vector<64xf32>
      %31 = vector.shape_cast %30 : vector<64xf32> to vector<1x64xf32>
      %cst_29 = arith.constant 8.000000e+00 : f32
      %32 = vector.broadcast %cst_29 : f32 to vector<1x64xf32>
      %33 = arith.divf %31, %32 : vector<1x64xf32>
      %34 = vector.broadcast %33 : vector<1x64xf32> to vector<8x64xf32>
      %35 = arith.subf %29, %34 : vector<8x64xf32>
      %36 = vector.broadcast %33 : vector<1x64xf32> to vector<8x64xf32>
      %37 = arith.subf %29, %36 : vector<8x64xf32>
      %38 = arith.mulf %35, %37 : vector<8x64xf32>
      %cst_30 = arith.constant dense<0.000000e+00> : vector<64xf32>
      %39 = vector.multi_reduction <add>, %38, %cst_30 [0] : vector<8x64xf32> to vector<64xf32>
      %40 = vector.shape_cast %39 : vector<64xf32> to vector<1x64xf32>
      %cst_31 = arith.constant 8.000000e+00 : f32
      %41 = vector.broadcast %cst_31 : f32 to vector<1x64xf32>
      %42 = arith.divf %40, %41 : vector<1x64xf32>
      %43 = vector.broadcast %33 : vector<1x64xf32> to vector<8x64xf32>
      %44 = arith.subf %29, %43 : vector<8x64xf32>
      %cst_32 = arith.constant 9.99999974E-6 : f32
      %45 = vector.broadcast %cst_32 : f32 to vector<1x64xf32>
      %46 = arith.addf %42, %45 : vector<1x64xf32>
      %47 = math.rsqrt %46 : vector<1x64xf32>
      %48 = vector.broadcast %47 : vector<1x64xf32> to vector<8x64xf32>
      %49 = arith.mulf %44, %48 : vector<8x64xf32>
      %50 = vector.broadcast %20 : vector<1x64xf32> to vector<8x64xf32>
      %51 = arith.mulf %49, %50 : vector<8x64xf32>
      %52 = vector.broadcast %21 : vector<1x64xf32> to vector<8x64xf32>
      %53 = arith.addf %51, %52 : vector<8x64xf32>
      %cst_33 = arith.constant 0.000000e+00 : f32
      %54 = vector.broadcast %cst_33 : f32 to vector<8x64xf32>
      %55 = arith.maximumf %53, %54 : vector<8x64xf32>
      %cst_34 = arith.constant dense<0.000000e+00> : vector<8x16xf32>
      %56 = tpu.matmul %55, %18, %cst_34 {dimension_numbers = #tpu.dot_dimension_numbers<[1], [0], [0], [1], [0, 0, 1, 1], [], []>} : vector<8x64xf32>, vector<64x16xf32>, vector<8x16xf32> -> vector<8x16xf32>
      %57 = vector.broadcast %22 : vector<1x16xf32> to vector<8x16xf32>
      %58 = arith.addf %56, %57 : vector<8x16xf32>
      %cst_35 = arith.constant dense<0.000000e+00> : vector<16xf32>
      %59 = vector.multi_reduction <add>, %58, %cst_35 [0] : vector<8x16xf32> to vector<16xf32>
      %60 = vector.shape_cast %59 : vector<16xf32> to vector<1x16xf32>
      %cst_36 = arith.constant 8.000000e+00 : f32
      %61 = vector.broadcast %cst_36 : f32 to vector<1x16xf32>
      %62 = arith.divf %60, %61 : vector<1x16xf32>
      %63 = vector.broadcast %62 : vector<1x16xf32> to vector<8x16xf32>
      %64 = arith.subf %58, %63 : vector<8x16xf32>
      %65 = vector.broadcast %62 : vector<1x16xf32> to vector<8x16xf32>
      %66 = arith.subf %58, %65 : vector<8x16xf32>
      %67 = arith.mulf %64, %66 : vector<8x16xf32>
      %cst_37 = arith.constant dense<0.000000e+00> : vector<16xf32>
      %68 = vector.multi_reduction <add>, %67, %cst_37 [0] : vector<8x16xf32> to vector<16xf32>
      %69 = vector.shape_cast %68 : vector<16xf32> to vector<1x16xf32>
      %cst_38 = arith.constant 8.000000e+00 : f32
      %70 = vector.broadcast %cst_38 : f32 to vector<1x16xf32>
      %71 = arith.divf %69, %70 : vector<1x16xf32>
      %72 = vector.broadcast %62 : vector<1x16xf32> to vector<8x16xf32>
      %73 = arith.subf %58, %72 : vector<8x16xf32>
      %cst_39 = arith.constant 9.99999974E-6 : f32
      %74 = vector.broadcast %cst_39 : f32 to vector<1x16xf32>
      %75 = arith.addf %71, %74 : vector<1x16xf32>
      %76 = math.rsqrt %75 : vector<1x16xf32>
      %77 = vector.broadcast %76 : vector<1x16xf32> to vector<8x16xf32>
      %78 = arith.mulf %73, %77 : vector<8x16xf32>
      %79 = vector.broadcast %23 : vector<1x16xf32> to vector<8x16xf32>
      %80 = arith.mulf %78, %79 : vector<8x16xf32>
      %81 = vector.broadcast %24 : vector<1x16xf32> to vector<8x16xf32>
      %82 = arith.addf %80, %81 : vector<8x16xf32>
      %cst_40 = arith.constant 0.000000e+00 : f32
      %83 = vector.broadcast %cst_40 : f32 to vector<8x16xf32>
      %84 = arith.maximumf %82, %83 : vector<8x16xf32>
      %85 = vector.broadcast %25 : vector<1x16xf32> to vector<8x16xf32>
      %86 = arith.mulf %84, %85 : vector<8x16xf32>
      %cst_41 = arith.constant dense<0.000000e+00> : vector<8xf32>
      %87 = vector.multi_reduction <add>, %86, %cst_41 [1] : vector<8x16xf32> to vector<8xf32>
      %88 = vector.shape_cast %87 : vector<8xf32> to vector<8x1xf32>
      %89 = vector.broadcast %26 : vector<1x1xf32> to vector<8x1xf32>
      %90 = arith.addf %88, %89 : vector<8x1xf32>
      %cst_42 = arith.constant 0.000000e+00 : f32
      %91 = vector.broadcast %cst_42 : f32 to vector<8x1xf32>
      %92 = arith.maximumf %90, %91 : vector<8x1xf32>
      %cst_43 = arith.constant 5.000000e-02 : f32
      %cst_44 = arith.constant 2.000000e+01 : f32
      %93 = vector.broadcast %cst_43 : f32 to vector<8x1xf32>
      %94 = arith.maximumf %93, %92 : vector<8x1xf32>
      %95 = vector.broadcast %cst_44 : f32 to vector<8x1xf32>
      %96 = arith.minimumf %95, %94 : vector<8x1xf32>
      %c0_45 = arith.constant 0 : index
      %c0_46 = arith.constant 0 : index
      %97 = vector.load %arg5[%c0_45, %c0_46] : memref<8x1xf32, #tpu.memory_space<vmem>>, vector<8x1xf32>
      tpu.vector_store %arg5[%c0_45, %c0_46], %96 {strides = array<i32>} : memref<8x1xf32, #tpu.memory_space<vmem>>, vector<8x1xf32>,
    } else {
    }
    return
  }
  func.func @transform_0(%arg0: i32) -> (i32, i32, i32) {
    %c0_i32 = arith.constant 0 : i32
    %c0_i32_0 = arith.constant 0 : i32
    %c0_i32_1 = arith.constant 0 : i32
    return %c0_i32, %c0_i32_0, %arg0 : i32, i32, i32
  }
  func.func @transform_1(%arg0: i32) -> (i32, i32, i32) {
    %c0_i32 = arith.constant 0 : i32
    %c0_i32_0 = arith.constant 0 : i32
    %c0_i32_1 = arith.constant 0 : i32
    return %c0_i32, %c0_i32_0, %arg0 : i32, i32, i32
  }
  func.func @transform_2(%arg0: i32) -> (i32, i32) {
    %c0_i32 = arith.constant 0 : i32
    %c0_i32_0 = arith.constant 0 : i32
    %c0_i32_1 = arith.constant 0 : i32
    return %c0_i32, %c0_i32_0 : i32, i32
  }
  func.func @transform_3(%arg0: i32) -> (i32, i32) {
    %c0_i32 = arith.constant 0 : i32
    %c0_i32_0 = arith.constant 0 : i32
    %c0_i32_1 = arith.constant 0 : i32
    return %c0_i32, %c0_i32_0 : i32, i32
  }
  func.func @transform_4(%arg0: i32) -> (i32, i32) {
    %c0_i32 = arith.constant 0 : i32
    %c0_i32_0 = arith.constant 0 : i32
    %c0_i32_1 = arith.constant 0 : i32
    return %c0_i32, %c0_i32_0 : i32, i32
  }
}

</mosaic_0001>

<bundles_post_ra>
// kernel: tpu_custom_call.1
= control target key start
LH: loop header
LB: loop body
LE: loop exit
PB: predicated region body
PF: predicated region fallthrough
CT: control target
= control target key end

     0   :  { %vm216_vm0 = vcmask 130048   ;;  %vm21_vm1 = vcmask 523264   ;;  %vm484_vm2 = vcmask 130112   ;;  %vm1189_vm3 = vmmov 0   ;;  %s2253_s0 = inlined_call_operand.vmem [shape: f32[8,64,16], index: 0, kind: input, shape index: {}]   ;;  %s2254_s1 = inlined_call_operand.vmem [shape: f32[8,64,16], index: 1, kind: input, shape index: {}]   ;;  %s2255_s2 = inlined_call_operand.vmem [shape: f32[128,64], index: 2, kind: input, shape index: {}]   ;;  %s2256_s3 = inlined_call_operand.vmem [shape: f32[8,64], index: 3, kind: input, shape index: {}]   ;;  %s2257_s4 = inlined_call_operand.vmem [shape: f32[8,1], index: 4, kind: output, shape index: {}]  }
   0x1   :  { %v31_v0 = vld [vmem:[%s2253_s0 + $0x40] sm:$0xff]  ;;  %v32_v5 = vld [vmem:[%s2253_s0 + $0x48] sm:$0xff]  ;;  %v33_v11 = vld [vmem:[%s2253_s0 + $0x50] sm:$0xff]  ;;  %vm491_vm4 = vcmask 195712   ;;  %vm498_vm5 = vcmask 261312   ;;  %vm505_vm6 = vcmask 326912  }
   0x2   :  { %v95_v1 = vld [vmem:[%s2254_s1 + $0x40] sm:$0xff]  ;;  %v96_v6 = vld [vmem:[%s2254_s1 + $0x48] sm:$0xff]  ;;  %v97_v14 = vld [vmem:[%s2254_s1 + $0x50] sm:$0xff]  ;;  %vm512_vm7 = vcmask 392512   ;;  %vm519_vm8 = vcmask 458112   ;;  %vm526_vm9 = vcmask 523712  }
   0x3   :  { %v23_v2 = vld [vmem:[%s2253_s0] sm:$0xff]  ;;  %v159_v3 = vsub.f32 %v31_v0, %v95_v1  ;;  %v160_v8 = vsub.f32 %v32_v5, %v96_v6  ;;  %v24_v9 = vld [vmem:[%s2253_s0 + $0x8] sm:$0xff]  ;;  %v25_v15 = vld [vmem:[%s2253_s0 + $0x10] sm:$0xff]  ;;  %v161_v19 = vsub.f32 %v33_v11, %v97_v14  ;;  %vm801_vm10 = vcmask 1041409  }
   0x4   :  { %v87_v4 = vld [vmem:[%s2254_s1] sm:$0xff]  ;;  %v88_v10 = vld [vmem:[%s2254_s1 + $0x8] sm:$0xff]  ;;  %v89_v16 = vld [vmem:[%s2254_s1 + $0x10] sm:$0xff]  ;;  %vm803_vm11 = vcmask 1042434   ;;  %vm805_vm12 = vcmask 1043459   ;;  %vm807_vm13 = vcmask 1044484  }
   0x5   :  { %v151_v7 = vsub.f32 %v23_v2, %v87_v4  ;;  %v241_v12 = vsel %vm216_vm0, %v159_v3, 0.0  ;;  %v152_v13 = vsub.f32 %v24_v9, %v88_v10  ;;  %v244_v18 = vsel %vm216_vm0, %v160_v8, 0.0  ;;  %v40_v22 = vld [vmem:[%s2253_s0 + $0x88] sm:$0xff]  ;;  %v39_v24 = vld [vmem:[%s2253_s0 + $0x80] sm:$0xff]  ;;  %v34_v30 = vld [vmem:[%s2253_s0 + $0x58] sm:$0xff] }
   0x6   :  { %242 = vadd.xlane.f32.xlu1 %v241_v12  ;;  %v153_v21 = vsub.f32 %v25_v15, %v89_v16  ;;  %v104_v23 = vld [vmem:[%s2254_s1 + $0x88] sm:$0xff]  ;;  %v103_v25 = vld [vmem:[%s2254_s1 + $0x80] sm:$0xff]  ;;  %v247_v26 = vsel %vm216_vm0, %v161_v19, 0.0  ;;  %v98_v31 = vld [vmem:[%s2254_s1 + $0x58] sm:$0xff]  ;;  %vm809_vm14 = vcmask 1045509   ;;  %vm811_vm15 = vcmask 1046534  }
   0x7   :  { %v217_v17 = vsel %vm216_vm0, %v151_v7, 0.0  ;;  %v220_v20 = vsel %vm216_vm0, %v152_v13, 0.0  ;;  %v168_v27 = vsub.f32 %v40_v22, %v104_v23  ;;  %v167_v29 = vsub.f32 %v39_v24, %v103_v25  ;;  %v26_v32 = vld [vmem:[%s2253_s0 + $0x18] sm:$0xff]  ;;  %v47_v38 = vld [vmem:[%s2253_s0 + $0xc0] sm:$0xff]  ;;  %v41_v40 = vld [vmem:[%s2253_s0 + $0x90] sm:$0xff] }
   0x8   :  { %218 = vadd.xlane.f32.xlu0 %v217_v17  ;;  %v223_v28 = vsel %vm216_vm0, %v153_v21, 0.0  ;;  %v90_v33 = vld [vmem:[%s2254_s1 + $0x18] sm:$0xff]  ;;  %v162_v35 = vsub.f32 %v34_v30, %v98_v31  ;;  %v111_v39 = vld [vmem:[%s2254_s1 + $0xc0] sm:$0xff]  ;;  %v105_v41 = vld [vmem:[%s2254_s1 + $0x90] sm:$0xff] }
   0x9   :  { %v268_v34 = vsel %vm216_vm0, %v168_v27, 0.0  ;;  %v265_v36 = vsel %vm216_vm0, %v167_v29, 0.0  ;;  %v154_v37 = vsub.f32 %v26_v32, %v90_v33  ;;  %v175_v43 = vsub.f32 %v47_v38, %v111_v39  ;;  %v27_v46 = vld [vmem:[%s2253_s0 + $0x20] sm:$0xff]  ;;  %v48_v48 = vld [vmem:[%s2253_s0 + $0xc8] sm:$0xff]  ;;  %v42_v50 = vld [vmem:[%s2253_s0 + $0x98] sm:$0xff] }
   0xa   :  { %245 = vadd.xlane.f32.xlu1 %v244_v18  ;;  %v250_v42 = vsel %vm216_vm0, %v162_v35, 0.0  ;;  %v169_v45 = vsub.f32 %v41_v40, %v105_v41  ;;  %v91_v47 = vld [vmem:[%s2254_s1 + $0x20] sm:$0xff]  ;;  %v112_v49 = vld [vmem:[%s2254_s1 + $0xc8] sm:$0xff]  ;;  %v106_v51 = vld [vmem:[%s2254_s1 + $0x98] sm:$0xff] }
   0xb   :  { %v226_v44 = vsel %vm216_vm0, %v154_v37, 0.0  ;;  %v289_v52 = vsel %vm216_vm0, %v175_v43, 0.0  ;;  %v155_v53 = vsub.f32 %v27_v46, %v91_v47  ;;  %v35_v54 = vld [vmem:[%s2253_s0 + $0x60] sm:$0xff]  ;;  %v1325_v56 = vld [vmem:[%s2253_s0 + $0x188] sm:$0xff]  ;;  %v176_v59 = vsub.f32 %v48_v48, %v112_v49  ;;  %v1348_v63 = vld [vmem:[%s2253_s0 + $0x78] sm:$0xff] }
   0xc   :  { %221 = vadd.xlane.f32.xlu0 %v220_v20  ;;  %v99_v55 = vld [vmem:[%s2254_s1 + $0x60] sm:$0xff]  ;;  %v1330_v57 = vld [vmem:[%s2254_s1 + $0x188] sm:$0xff]  ;;  %v271_v58 = vsel %vm216_vm0, %v169_v45, 0.0  ;;  %v1355_v1 = vld [vmem:[%s2254_s1 + $0x78] sm:$0xff]  ;;  %v170_v12 = vsub.f32 %v42_v50, %v106_v51 }
   0xd   :  { %v1338_v61 = vld [vmem:[%s2253_s0 + $0x180] sm:$0xff]  ;;  %v1360_v2 = vld [vmem:[%s2253_s0 + $0x38] sm:$0xff]  ;;  %v1384_v8 = vld [vmem:[%s2253_s0 + $0xe8] sm:$0xff]  ;;  %v229_v11 = vsel %vm216_vm0, %v155_v53, 0.0  ;;  %v292_v19 = vsel %vm216_vm0, %v176_v59, 0.0  ;;  %v163_v20 = vsub.f32 %v35_v54, %v99_v55 }
   0xe   :  { %248 = vadd.xlane.f32.xlu1 %v247_v26  ;;  %v1343_v62 = vld [vmem:[%s2254_s1 + $0x180] sm:$0xff]  ;;  %v1365_v3 = vld [vmem:[%s2254_s1 + $0x38] sm:$0xff]  ;;  %v1389_v9 = vld [vmem:[%s2254_s1 + $0xe8] sm:$0xff]  ;;  %v274_v37 = vsel %vm216_vm0, %v170_v12, 0.0 }
   0xf   :  { %v1370_v4 = vld [vmem:[%s2253_s0 + $0x100] sm:$0xff]  ;;  %v1394_v10 = vld [vmem:[%s2253_s0 + $0xb0] sm:$0xff]  ;;  %v1415_v17 = vld [vmem:[%s2253_s0 + $0x158] sm:$0xff]  ;;  %v253_v45 = vsel %vm216_vm0, %v163_v20, 0.0 }
  0x10   :  { %224 = vadd.xlane.f32.xlu0 %v223_v28  ;;  %v1375_v5 = vld [vmem:[%s2254_s1 + $0x100] sm:$0xff]  ;;  %v1400_v13 = vld [vmem:[%s2253_s0 + $0xd0] sm:$0xff]  ;;  %v1420_v18 = vld [vmem:[%s2254_s1 + $0x158] sm:$0xff] }
  0x11   :  { %v113_v14 = vld [vmem:[%s2254_s1 + $0xd0] sm:$0xff]  ;;  %v1430_v23 = vld [vmem:[%s2253_s0 + $0x120] sm:$0xff]  ;;  %v1462_v30 = vld [vmem:[%s2253_s0 + $0x28] sm:$0xff]  ;;  %v183_v38 = vsub.f32 %v1370_v4, %v1375_v5 }
  0x12   :  { %269 = vadd.xlane.f32.xlu1 %v268_v34  ;;  %v1410_v16 = vld [vmem:[%s2254_s1 + $0xb0] sm:$0xff]  ;;  %v1435_v24 = vld [vmem:[%s2254_s1 + $0x120] sm:$0xff]  ;;  %v1467_v31 = vld [vmem:[%s2254_s1 + $0x28] sm:$0xff]  ;;  %v177_v46 = vsub.f32 %v1400_v13, %v113_v14 }
  0x13   :  { %v1440_v25 = vld [vmem:[%s2253_s0 + $0x1c0] sm:$0xff]  ;;  %v1452_v28 = vld [vmem:[%s2253_s0 + $0x190] sm:$0xff]  ;;  %v1476_v34 = vld [vmem:[%s2253_s0 + $0xb8] sm:$0xff]  ;;  %v313_v14 = vsel %vm216_vm0, %v183_v38, 0.0 }
  0x14   :  { %266 = vadd.xlane.f32.xlu0 %v265_v36  ;;  %v1447_v27 = vld [vmem:[%s2254_s1 + $0x1c0] sm:$0xff]  ;;  %v1457_v29 = vld [vmem:[%s2254_s1 + $0x190] sm:$0xff]  ;;  %v1481_v35 = vld [vmem:[%s2254_s1 + $0xb8] sm:$0xff]  ;;  %v295_v38 = vsel %vm216_vm0, %v177_v46, 0.0 }
  0x15   :  { %v1486_v36 = vld [vmem:[%s2253_s0 + $0x1c8] sm:$0xff]  ;;  %v1525_v49 = vld [vmem:[%s2253_s0 + $0xf0] sm:$0xff]  ;;  %v1535_v51 = vld [vmem:[%s2253_s0 + $0x198] sm:$0xff] }
  0x16   :  { %251 = vadd.xlane.f32.xlu1 %v250_v42  ;;  %v1494_v39 = vld [vmem:[%s2253_s0 + $0x108] sm:$0xff]  ;;  %v1530_v50 = vld [vmem:[%s2254_s1 + $0xf0] sm:$0xff]  ;;  %v1542_v53 = vld [vmem:[%s2254_s1 + $0x198] sm:$0xff] }
  0x17   :  { %v120_v40 = vld [vmem:[%s2254_s1 + $0x108] sm:$0xff]  ;;  %v1547_v54 = vld [vmem:[%s2253_s0 + $0x160] sm:$0xff]  ;;  %v1576_v12 = vld [vmem:[%s2254_s1 + $0xf8] sm:$0xff] }
  0x18   :  { %227 = vadd.xlane.f32.xlu0 %v226_v44  ;;  %v1504_v42 = vld [vmem:[%s2254_s1 + $0x1c8] sm:$0xff]  ;;  %v1552_v55 = vld [vmem:[%s2254_s1 + $0x160] sm:$0xff]  ;;  %v1581_v13 = vld [vmem:[%s2253_s0 + $0x1d0] sm:$0xff]  ;;  %v184_v4 = vsub.f32 %v1494_v39, %v120_v40 }
  0x19   :  { %v1509_v43 = vld [vmem:[%s2253_s0 + $0x128] sm:$0xff]  ;;  %v1562_v59 = vld [vmem:[%s2254_s1 + $0xa0] sm:$0xff]  ;;  %v1618_v48 = vld [vmem:[%s2253_s0 + $0x130] sm:$0xff] }
  0x1a   :  { %290 = vadd.xlane.f32.xlu1 %v289_v52  ;;  %v1514_v44 = vld [vmem:[%s2254_s1 + $0x128] sm:$0xff]  ;;  %v1623_v47 = vld [vmem:[%s2254_s1 + $0x130] sm:$0xff]  ;;  %v1628_v39 = vld [vmem:[%s2253_s0 + $0x1d8] sm:$0xff] }
  0x1b   :  { %v36_v20 = vld [vmem:[%s2253_s0 + $0x68] sm:$0xff]  ;;  %v1635_v46 = vld [vmem:[%s2254_s1 + $0x1d8] sm:$0xff]  ;;  %v1640_v52 = vld [vmem:[%s2253_s0 + $0x1a0] sm:$0xff] }
  0x1c   :  { %272 = vadd.xlane.f32.xlu0 %v271_v58  ;;  %v1557_v58 = vld [vmem:[%s2253_s0 + $0xa0] sm:$0xff]  ;;  %v57_v40 = vld [vmem:[%s2253_s0 + $0x110] sm:$0xff]  ;;  %v1670_v22 = vld [vmem:[%s2253_s0 + $0x138] sm:$0xff] }
  0x1d   :  { %v1645_v5 = vld [vmem:[%s2254_s1 + $0x1a0] sm:$0xff]  ;;  %v121_v41 = vld [vmem:[%s2254_s1 + $0x110] sm:$0xff]  ;;  %v171_v32 = vsub.f32 %v1557_v58, %v1562_v59  ;;  %v50_v21 = vld [vmem:[%s2253_s0 + $0xd8] sm:$0xff] }
  0x1e   :  { %230 = vadd.xlane.f32.xlu1 %v229_v11  ;;  %v1571_v11 = vld [vmem:[%s2253_s0 + $0xf8] sm:$0xff]  ;;  %v1660_v26 = vld [vmem:[%s2253_s0 + $0x170] sm:$0xff]  ;;  %v1691_v58 = vld [vmem:[%s2253_s0 + $0x1e0] sm:$0xff] }
  0x1f   :  { %v114_v15 = vld [vmem:[%s2254_s1 + $0xd8] sm:$0xff]  ;;  %2274 = vst [vmem:[#allocation4_spill] sm:$0xff] %v1691_v58  ;;  %v1696_v59 = vld [vmem:[%s2254_s1 + $0x1e0] sm:$0xff]  ;;  %v1706_v60 = vld [vmem:[%s2253_s0 + $0x1a8] sm:$0xff] }
  0x20   :  { %293 = vadd.xlane.f32.xlu0 %v292_v19  ;;  %v156_v19 = vsub.f32 %v1462_v30, %v1467_v31  ;;  %v1602_v30 = vld [vmem:[%s2253_s0 + $0x168] sm:$0xff]  ;;  %2275 = vst [vmem:[#allocation5_spill] sm:$0xff] %v1696_v59  ;;  %2276 = vst [vmem:[#allocation6_spill] sm:$0xff] %v1706_v60  ;;  %v1728_v0 = vld [vmem:[%s2253_s0 + $0x178] sm:$0xff] }
  0x21   :  { %v1607_v31 = vld [vmem:[%s2254_s1 + $0x168] sm:$0xff]  ;;  %2280 = vst [vmem:[#allocation10_spill] sm:$0xff] %v1728_v0  ;;  %v1733_v7 = vld [vmem:[%s2254_s1 + $0x178] sm:$0xff]  ;;  %v1768_v0 = vld [vmem:[%s2253_s0 + $0x1f0] sm:$0xff] }
  0x22   :  { %275 = vadd.xlane.f32.xlu1 %v274_v37  ;;  %v100_v37 = vld [vmem:[%s2254_s1 + $0x68] sm:$0xff]  ;;  %v232_v33 = vsel %vm216_vm0, %v156_v19, 0.0  ;;  %v316_v19 = vsel %vm216_vm0, %v184_v4, 0.0  ;;  %v1716_v4 = vld [vmem:[%s2253_s0 + $0x1b0] sm:$0xff]  ;;  %2281 = vst [vmem:[#allocation11_spill] sm:$0xff] %v1733_v7  ;;  %v1745_v59 = vld [vmem:[%s2253_s0 + $0x1b8] sm:$0xff] }
  0x23   :  { %v164_v6 = vsub.f32 %v36_v20, %v100_v37  ;;  %2278 = vst [vmem:[#allocation8_spill] sm:$0xff] %v1716_v4  ;;  %v1723_v37 = vld [vmem:[%s2254_s1 + $0x1b0] sm:$0xff]  ;;  %v64_v20 = vld [vmem:[%s2253_s0 + $0x148] sm:$0xff]  ;;  %2282 = vst [vmem:[#allocation12_spill] sm:$0xff] %v1745_v59 }
  0x24   :  { %254 = vadd.xlane.f32.xlu0 %v253_v45  ;;  %v1597_v45 = vld [vmem:[%s2254_s1 + $0x1d0] sm:$0xff]  ;;  %2279 = vst [vmem:[#allocation9_spill] sm:$0xff] %v1723_v37  ;;  %v1750_v58 = vld [vmem:[%s2254_s1 + $0x1b8] sm:$0xff]  ;;  %v185_v37 = vsub.f32 %v57_v40, %v121_v41  ;;  %v1763_v7 = vld [vmem:[%s2254_s1 + $0x1e8] sm:$0xff]  ;;  %v178_v41 = vsub.f32 %v50_v21, %v114_v15 }
  0x25   :  { %2283 = vst [vmem:[#allocation13_spill] sm:$0xff] %v1750_v58  ;;  %2285 = vst [vmem:[#allocation15_spill] sm:$0xff] %v1763_v7  ;;  %v128_v40 = vld [vmem:[%s2254_s1 + $0x148] sm:$0xff]  ;;  %v1786_v59 = vld [vmem:[%s2253_s0 + $0x1f8] sm:$0xff] }
  0x26   :  { %314 = vadd.xlane.f32.xlu1 %v313_v14  ;;  %v1665_v14 = vld [vmem:[%s2254_s1 + $0x170] sm:$0xff]  ;;  %2286 = vst [vmem:[#allocation16_spill] sm:$0xff] %v1768_v0  ;;  %v63_v15 = vld [vmem:[%s2253_s0 + $0x140] sm:$0xff]  ;;  %v319_v60 = vsel %vm216_vm0, %v185_v37, 0.0  ;;  %v298_v0 = vsel %vm216_vm0, %v178_v41, 0.0 }
  0x27   :  { %2273 = vst [vmem:[#allocation3_spill] sm:$0xff] %v1665_v14  ;;  %v1711_v14 = vld [vmem:[%s2254_s1 + $0x1a8] sm:$0xff]  ;;  %v127_v21 = vld [vmem:[%s2254_s1 + $0x140] sm:$0xff]  ;;  %v101_v4 = vld [vmem:[%s2254_s1 + $0x70] sm:$0xff] }
  0x28   :  { %296 = vadd.xlane.f32.xlu0 %v295_v38  ;;  %v1686_v38 = vld [vmem:[%s2254_s1 + $0x138] sm:$0xff]  ;;  %2277 = vst [vmem:[#allocation7_spill] sm:$0xff] %v1711_v14  ;;  %v277_v14 = vsel %vm216_vm0, %v171_v32, 0.0  ;;  %v256_v32 = vsel %vm216_vm0, %v164_v6, 0.0  ;;  %v191_v7 = vsub.f32 %v63_v15, %v127_v21  ;;  %v29_v58 = vld [vmem:[%s2253_s0 + $0x30] sm:$0xff]  ;;  %v115_v15 = vld [vmem:[%s2254_s1 + $0xe0] sm:$0xff] }
  0x29   :  { %v1791_v6 = vld [vmem:[%s2254_s1 + $0x1f8] sm:$0xff]  ;;  %v44_v21 = vld [vmem:[%s2253_s0 + $0xa8] sm:$0xff] }
  0x2a   :  { %233 = vadd.xlane.f32.xlu1 %v232_v33  ;;  %v1755_v33 = vld [vmem:[%s2253_s0 + $0x1e8] sm:$0xff] }
  0x2b   :  { %2284 = vst [vmem:[#allocation14_spill] sm:$0xff] %v1755_v33  ;;  %v37_v33 = vld [vmem:[%s2253_s0 + $0x70] sm:$0xff] }
  0x2c   :  { %317 = vadd.xlane.f32.xlu0 %v316_v19  ;;  %v1773_v19 = vld [vmem:[%s2254_s1 + $0x1f0] sm:$0xff]  ;;  %v165_v37 = vsub.f32 %v37_v33, %v101_v4 }
  0x2d   :  { %2287 = vst [vmem:[#allocation17_spill] sm:$0xff] %v1773_v19  ;;  %v192_v19 = vsub.f32 %v64_v20, %v128_v40  ;;  %v51_v40 = vld [vmem:[%s2253_s0 + $0xe0] sm:$0xff]  ;;  %v65_v33 = vld [vmem:[%s2253_s0 + $0x150] sm:$0xff] }
  0x2e   :  { %278 = vadd.xlane.f32.xlu1 %v277_v14  ;;  %v93_v14 = vld [vmem:[%s2254_s1 + $0x30] sm:$0xff] }
  0x2f   :  { %v340_v20 = vsel %vm216_vm0, %v192_v19, 0.0  ;;  %v157_v41 = vsub.f32 %v29_v58, %v93_v14  ;;  %v129_v19 = vld [vmem:[%s2254_s1 + $0x150] sm:$0xff]  ;;  %v58_v14 = vld [vmem:[%s2253_s0 + $0x118] sm:$0xff] }
  0x30   :  { %257 = vadd.xlane.f32.xlu0 %v256_v32  ;;  %v337_v32 = vsel %vm216_vm0, %v191_v7, 0.0  ;;  %v179_v7 = vsub.f32 %v51_v40, %v115_v15 }
  0x31   :  { %v235_v58 = vsel %vm216_vm0, %v157_v41, 0.0 }
  0x32   :  { %320 = vadd.xlane.f32.xlu1 %v319_v60  ;;  %v108_v60 = vld [vmem:[%s2254_s1 + $0xa8] sm:$0xff] }
  0x33   :  { %v172_v4 = vsub.f32 %v44_v21, %v108_v60  ;;  %v2288_v60 = vsub.f32 %v1325_v56, %v1330_v57  ;;  %v2292_v56 = vsub.f32 %v1384_v8, %v1389_v9  ;;  %v2296_v8 = vsub.f32 %v1440_v25, %v1447_v27 }
  0x34   :  { %299 = vadd.xlane.f32.xlu0 %v298_v0  ;;  %v259_v0 = vsel %vm216_vm0, %v165_v37, 0.0  ;;  %v301_v37 = vsel %vm216_vm0, %v179_v7, 0.0  ;;  %v2289_v7 = vsub.f32 %v1338_v61, %v1343_v62  ;;  %v2293_v61 = vsub.f32 %v1394_v10, %v1410_v16 }
  0x35   :  { %v280_v41 = vsel %vm216_vm0, %v172_v4, 0.0  ;;  %v2290_v4 = vsub.f32 %v1348_v63, %v1355_v1  ;;  %v304_v57 = vsel %vm216_vm0, %v2292_v56, 0.0  ;;  %v2294_v63 = vsub.f32 %v1415_v17, %v1420_v18  ;;  %v2329_v56 = vld [vmem:[#allocation15_spill] sm:$0xff] }
  0x36   :  { %341 = vadd.xlane.f32.xlu1 %v340_v20  ;;  %v122_v20 = vld [vmem:[%s2254_s1 + $0x118] sm:$0xff]  ;;  %v283_v62 = vsel %vm216_vm0, %v2293_v61, 0.0  ;;  %v385_v9 = vsel %vm216_vm0, %v2296_v8, 0.0  ;;  %v2297_v10 = vsub.f32 %v1452_v28, %v1457_v29  ;;  %v2298_v17 = vsub.f32 %v1476_v34, %v1481_v35 }
  0x37   :  { %v186_v40 = vsub.f32 %v58_v14, %v122_v20  ;;  %v346_v1 = vsel %vm216_vm0, %v2294_v63, 0.0  ;;  %v2300_v25 = vsub.f32 %v1509_v43, %v1514_v44  ;;  %v2301_v28 = vsub.f32 %v1525_v49, %v1530_v50 }
  0x38   :  { %338 = vadd.xlane.f32.xlu0 %v337_v32  ;;  %v193_v32 = vsub.f32 %v65_v33, %v129_v19  ;;  %v262_v33 = vsel %vm216_vm0, %v2290_v4, 0.0  ;;  %v2291_v19 = vsub.f32 %v1360_v2, %v1365_v3  ;;  %v2295_v2 = vsub.f32 %v1430_v23, %v1435_v24  ;;  %v2326_v4 = vld [vmem:[#allocation13_spill] sm:$0xff] }
  0x39   :  { %v322_v21 = vsel %vm216_vm0, %v186_v40, 0.0  ;;  %v367_v16 = vsel %vm216_vm0, %v2297_v10, 0.0  ;;  %v286_v18 = vsel %vm216_vm0, %v2298_v17, 0.0  ;;  %v2299_v23 = vsub.f32 %v1486_v36, %v1504_v42 }
  0x3a   :  { %260 = vadd.xlane.f32.xlu1 %v259_v0  ;;  %v343_v15 = vsel %vm216_vm0, %v193_v32, 0.0  ;;  %v364_v0 = vsel %vm216_vm0, %v2288_v60, 0.0  ;;  %v238_v14 = vsel %vm216_vm0, %v2291_v19, 0.0  ;;  %v325_v3 = vsel %vm216_vm0, %v2295_v2, 0.0  ;;  %v2317_v32 = vld [vmem:[#allocation7_spill] sm:$0xff]  ;;  %v2333_v2 = vld [vmem:[#allocation17_spill] sm:$0xff] }
  0x3b   :  { %v388_v24 = vsel %vm216_vm0, %v2299_v23, 0.0  ;;  %v328_v27 = vsel %vm216_vm0, %v2300_v25, 0.0  ;;  %v307_v29 = vsel %vm216_vm0, %v2301_v28, 0.0  ;;  %v2302_v34 = vsub.f32 %v1535_v51, %v1542_v53  ;;  %v2323_v60 = vld [vmem:[#allocation11_spill] sm:$0xff] }
  0x3c   :  { %236 = vadd.xlane.f32.xlu0 %v235_v58  ;;  %v361_v58 = vsel %vm216_vm0, %v2289_v7, 0.0  ;;  %v2303_v36 = vsub.f32 %v1547_v54, %v1552_v55  ;;  %v2304_v43 = vsub.f32 %v1571_v11, %v1576_v12  ;;  %v2305_v49 = vsub.f32 %v1581_v13, %v1597_v45 }
  0x3d   :  { %v370_v35 = vsel %vm216_vm0, %v2302_v34, 0.0  ;;  %v2306_v51 = vsub.f32 %v1602_v30, %v1607_v31  ;;  %v2307_v54 = vsub.f32 %v1618_v48, %v1623_v47  ;;  %v2308_v11 = vsub.f32 %v1628_v39, %v1635_v46  ;;  %v2310_v30 = vld [vmem:[#allocation3_spill] sm:$0xff]  ;;  %v2313_v39 = vld [vmem:[#allocation4_spill] sm:$0xff]  ;;  %v2314_v46 = vld [vmem:[#allocation5_spill] sm:$0xff] }
  0x3e   :  { %302 = vadd.xlane.f32.xlu1 %v301_v37  ;;  %v349_v42 = vsel %vm216_vm0, %v2303_v36, 0.0  ;;  %v310_v44 = vsel %vm216_vm0, %v2304_v43, 0.0  ;;  %v391_v50 = vsel %vm216_vm0, %v2305_v49, 0.0  ;;  %v2309_v13 = vsub.f32 %v1640_v52, %v1645_v5  ;;  %v2316_v5 = vld [vmem:[#allocation6_spill] sm:$0xff]  ;;  %v828_v36 = vld [vmem:[%s2255_s2 + $0x18] sm:$0xff] }
  0x3f   :  { %v352_v53 = vsel %vm216_vm0, %v2306_v51, 0.0  ;;  %v331_v55 = vsel %vm216_vm0, %v2307_v54, 0.0  ;;  %v394_v12 = vsel %vm216_vm0, %v2308_v11, 0.0  ;;  %v2311_v31 = vsub.f32 %v1660_v26, %v2310_v30  ;;  %v2319_v26 = vld [vmem:[#allocation8_spill] sm:$0xff]  ;;  %v829_v43 = vld [vmem:[%s2255_s2 + $0x20] sm:$0xff]  ;;  %v832_v30 = vld [vmem:[%s2255_s2 + $0x38] sm:$0xff] }
  0x40   :  { %281 = vadd.xlane.f32.xlu0 %v280_v41  ;;  %v373_v45 = vsel %vm216_vm0, %v2309_v13, 0.0  ;;  %v2312_v48 = vsub.f32 %v1670_v22, %v1686_v38  ;;  %v2315_v37 = vsub.f32 %v2313_v39, %v2314_v46  ;;  %v2318_v41 = vsub.f32 %v2316_v5, %v2317_v32  ;;  %v2322_v38 = vld [vmem:[#allocation10_spill] sm:$0xff] }
  0x41   :  { %v355_v47 = vsel %vm216_vm0, %v2311_v31, 0.0  ;;  %v1188_v34 = vmov 0.0|0.0  }
  0x42   :  { %344 = vadd.xlane.f32.xlu1 %v343_v15  ;;  %v334_v20 = vsel %vm216_vm0, %v2312_v48, 0.0  ;;  %v397_v52 = vsel %vm216_vm0, %v2315_v37, 0.0  ;;  %v376_v40 = vsel %vm216_vm0, %v2318_v41, 0.0  ;;  %v2320_v15 = vld [vmem:[#allocation9_spill] sm:$0xff]  ;;  %1156 = vmatprep.subr.bf16.mxu0 %v1188_v34 }
  0x43   :  { %1168 = vmatprep.subr.bf16.mxu1 %v1188_v34 }
  0x44   :  { %323 = vadd.xlane.f32.xlu0 %v322_v21  ;;  %v2321_v21 = vsub.f32 %v2319_v26, %v2320_v15 }
  0x46   :  { %365 = vadd.xlane.f32.xlu1 %v364_v0  ;;  %v379_v22 = vsel %vm216_vm0, %v2321_v21, 0.0  ;;  %v2324_v0 = vsub.f32 %v2322_v38, %v2323_v60 }
  0x48   :  { %362 = vadd.xlane.f32.xlu0 %v361_v58  ;;  %v358_v7 = vsel %vm216_vm0, %v2324_v0, 0.0  ;;  %v2325_v58 = vld [vmem:[#allocation12_spill] sm:$0xff] }
  0x4a   :  { %263 = vadd.xlane.f32.xlu1 %v262_v33  ;;  %v2327_v33 = vsub.f32 %v2325_v58, %v2326_v4 }
  0x4c   :  { %239 = vadd.xlane.f32.xlu0 %v238_v14  ;;  %v382_v19 = vsel %vm216_vm0, %v2327_v33, 0.0  ;;  %v2328_v14 = vld [vmem:[#allocation14_spill] sm:$0xff] }
  0x4e   :  { %305 = vadd.xlane.f32.xlu1 %v304_v57  ;;  %v2330_v57 = vsub.f32 %v2328_v14, %v2329_v56 }
  0x50   :  { %284 = vadd.xlane.f32.xlu0 %v283_v62  ;;  %v400_v61 = vsel %vm216_vm0, %v2330_v57, 0.0  ;;  %v2331_v62 = vsub.f32 %v1786_v59, %v1791_v6  ;;  %v825_v6 = vld [vmem:[%s2255_s2] sm:$0xff] }
  0x52   :  { %347 = vadd.xlane.f32.xlu1 %v346_v1  ;;  %v406_v63 = vsel %vm216_vm0, %v2331_v62, 0.0  ;;  %v2332_v1 = vld [vmem:[#allocation16_spill] sm:$0xff] }
  0x54   :  { %326 = vadd.xlane.f32.xlu0 %v325_v3  ;;  %v2334_v3 = vsub.f32 %v2332_v1, %v2333_v2 }
  0x56   :  { %386 = vadd.xlane.f32.xlu1 %v385_v9  ;;  %v403_v8 = vsel %vm216_vm0, %v2334_v3, 0.0  ;;  %v473_v9 = vlaneseq }
  0x58   :  { %368 = vadd.xlane.f32.xlu0 %v367_v16  ;;  %v1975_v10 = vand.u32 127, %v473_v9  ;;  %v1187_v16 = vmov 0.0   ;;  %v1978_v17 = vshrl.u32 %v473_v9, 7 }
  0x59   :  { %22 = vst.msk [vmem:[#allocation2] sm:$0xff] %vm21_vm1, %v1187_v16  ;;  %1134 = vmatprep.mubr.msk.f32.mxu0 %vm1189_vm3, %v1187_v16  ;;  %1153 = vmatprep.mubr.msk.f32.mxu1 %vm1189_vm3, %v1187_v16 }
  0x5a   :  { %287 = vadd.xlane.f32.xlu1 %v286_v18  ;;  %v479_v59 = vadd.s32 4294967288, %v1975_v10  ;;  %v826_v18 = vld [vmem:[%s2255_s2 + $0x8] sm:$0xff]  ;;  %v1989_v25 = vsub.s32 %v1975_v10, %v1978_v17  ;;  %v493_v39 = vadd.s32 4294967272, %v1975_v10  ;;  %v500_v0 = vadd.s32 4294967264, %v1975_v10 }
  0x5c   :  { %389 = vadd.xlane.f32.xlu0 %v388_v24  ;;  %v1157_v24 = vpack.c.bf16 %v826_v18, %v825_v6  ;;  %v1992_v28 = vsub.s32 %v479_v59, %v1978_v17  ;;  %v2034_v26 = vsub.s32 %v493_v39, %v1978_v17  ;;  %v2044_v14 = vsub.s32 %v500_v0, %v1978_v17 }
  0x5d   :  { %v507_v6 = vadd.s32 4294967256, %v1975_v10  ;;  %v514_v39 = vadd.s32 4294967248, %v1975_v10 }
  0x5e   :  { %329 = vadd.xlane.f32.xlu1 %v328_v27  ;;  %1158 = vmatpush3.bf16.msra.mxu0 %v1157_v24 }
  0x5f   :  { %1159 = vmatprep.subr.bf16.mxu0 %v1188_v34 }
  0x60   :  { %308 = vadd.xlane.f32.xlu0 %v307_v29  ;;  %v486_v29 = vadd.s32 4294967280, %v1975_v10 }
  0x62   :  { %371 = vadd.xlane.f32.xlu1 %v370_v35  ;;  %v827_v35 = vld [vmem:[%s2255_s2 + $0x10] sm:$0xff]  ;;  %v2013_v54 = vsub.s32 %v486_v29, %v1978_v17 }
  0x64   :  { %350 = vadd.xlane.f32.xlu0 %v349_v42  ;;  %v1160_v42 = vpack.c.bf16 %v828_v36, %v827_v35  ;;  %v2059_v35 = vsub.s32 %v507_v6, %v1978_v17 }
  0x66   :  { %311 = vadd.xlane.f32.xlu1 %v310_v44  ;;  %v830_v44 = vld [vmem:[%s2255_s2 + $0x28] sm:$0xff]  ;;  %1161 = vmatpush3.bf16.msra.mxu0 %v1160_v42 }
  0x67   :  { %1162 = vmatprep.subr.bf16.mxu0 %v1188_v34 }
  0x68   :  { %392 = vadd.xlane.f32.xlu0 %v391_v50 }
  0x6a   :  { %353 = vadd.xlane.f32.xlu1 %v352_v53 }
  0x6c   :  { %332 = vadd.xlane.f32.xlu0 %v331_v55 }
  0x6e   :  { %395 = vadd.xlane.f32.xlu1 %v394_v12  ;;  %v1163_v12 = vpack.c.bf16 %v830_v44, %v829_v43 }
  0x70   :  { %374 = vadd.xlane.f32.xlu0 %v373_v45  ;;  %v831_v45 = vld [vmem:[%s2255_s2 + $0x30] sm:$0xff]  ;;  %1164 = vmatpush3.bf16.msra.mxu0 %v1163_v12 }
  0x71   :  { %v1166_v37 = vpack.c.bf16 %v832_v30, %v831_v45  ;;  %1165 = vmatprep.subr.bf16.mxu0 %v1188_v34 }
  0x72   :  { %356 = vadd.xlane.f32.xlu1 %v355_v47 }
  0x74   :  { %335 = vadd.xlane.f32.xlu0 %v334_v20  ;;  %1167 = vmatpush3.bf16.msra.mxu0 %v1166_v37 }
  0x76   :  { %398 = vadd.xlane.f32.xlu1 %v397_v52 }
  0x78   :  { %377 = vadd.xlane.f32.xlu0 %v376_v40 }
  0x7a   :  { %380 = vadd.xlane.f32.xlu1 %v379_v22 }
  0x7c   :  { %359 = vadd.xlane.f32.xlu0 %v358_v7 }
  0x7e   :  { %383 = vadd.xlane.f32.xlu1 %v382_v19 }
  0x80   :  { %401 = vadd.xlane.f32.xlu0 %v400_v61 }
  0x82   :  { %407 = vadd.xlane.f32.xlu1 %v406_v63 }
  0x84   :  { %404 = vadd.xlane.f32.xlu0 %v403_v8 }
  0x93   :  { %v243_v23 = vpop.xlane.xlu1 %242 }
  0x94   :  { %v531_v50 = vrot.slane %v243_v23, %v1989_v25 }
  0x95   :  { %v219_v27 = vpop.xlane.xlu0 %218 }
  0x96   :  { %v478_v55 = vrot.slane %v219_v27, %v1989_v25 }
  0x97   :  { %v246_v49 = vpop.xlane.xlu1 %245 }
  0x98   :  { %v535_v51 = vrot.slane %v246_v49, %v1992_v28 }
  0x99   :  { %v222_v53 = vpop.xlane.xlu0 %221 }
  0x9a   :  { %v483_v11 = vrot.slane %v222_v53, %v1992_v28  ;;  %v536_v13 = vsel %vm484_vm2, %v535_v51, %v531_v50 }
  0x9b   :  { %v249_v47 = vpop.xlane.xlu1 %248 }
  0x9c   :  { %v485_v31 = vsel %vm484_vm2, %v483_v11, %v478_v55  ;;  %v540_v48 = vrot.slane %v249_v47, %v2013_v54 }
  0x9d   :  { %v225_v20 = vpop.xlane.xlu0 %224 }
  0x9e   :  { %v490_v46 = vrot.slane %v225_v20, %v2013_v54  ;;  %v541_v52 = vsel %vm491_vm4, %v540_v48, %v536_v13 }
  0x9f   :  { %v270_v32 = vpop.xlane.xlu1 %269 }
  0xa0   :  { %v492_v5 = vsel %vm491_vm4, %v490_v46, %v485_v31  ;;  %v574_v41 = vrot.slane %v270_v32, %v1992_v28 }
  0xa1   :  { %v267_v40 = vpop.xlane.xlu0 %266 }
  0xa2   :  { %v570_v15 = vrot.slane %v267_v40, %v1989_v25  ;;  %v2081_v40 = vsub.s32 %v514_v39, %v1978_v17 }
  0xa3   :  { %v252_v22 = vpop.xlane.xlu1 %251 }
  0xa4   :  { %v575_v21 = vsel %vm484_vm2, %v574_v41, %v570_v15  ;;  %v545_v38 = vrot.slane %v252_v22, %v2034_v26 }
  0xa5   :  { %v228_v60 = vpop.xlane.xlu0 %227 }
  0xa6   :  { %v497_v7 = vrot.slane %v228_v60, %v2034_v26  ;;  %v546_v58 = vsel %vm498_vm5, %v545_v38, %v541_v52 }
  0xa7   :  { %v291_v33 = vpop.xlane.xlu1 %290 }
  0xa8   :  { %v499_v4 = vsel %vm498_vm5, %v497_v7, %v492_v5  ;;  %v609_v1 = vrot.slane %v291_v33, %v1989_v25 }
  0xa9   :  { %v273_v19 = vpop.xlane.xlu0 %272 }
  0xaa   :  { %v579_v56 = vrot.slane %v273_v19, %v2013_v54 }
  0xab   :  { %v231_v61 = vpop.xlane.xlu1 %230 }
  0xac   :  { %v580_v57 = vsel %vm491_vm4, %v579_v56, %v575_v21  ;;  %v504_v62 = vrot.slane %v231_v61, %v2044_v14 }
  0xad   :  { %v294_v63 = vpop.xlane.xlu0 %293 }
  0xae   :  { %v613_v2 = vrot.slane %v294_v63, %v1992_v28  ;;  %v506_v3 = vsel %vm505_vm6, %v504_v62, %v499_v4 }
  0xaf   :  { %v276_v9 = vpop.xlane.xlu1 %275 }
  0xb0   :  { %v614_v8 = vsel %vm484_vm2, %v613_v2, %v609_v1  ;;  %v584_v16 = vrot.slane %v276_v9, %v2034_v26 }
  0xb1   :  { %v255_v59 = vpop.xlane.xlu0 %254 }
  0xb2   :  { %v550_v18 = vrot.slane %v255_v59, %v2044_v14  ;;  %v585_v23 = vsel %vm498_vm5, %v584_v16, %v580_v57  ;;  %v521_v57 = vadd.s32 4294967240, %v1975_v10 }
  0xb3   :  { %v315_v27 = vpop.xlane.xlu1 %314 }
  0xb4   :  { %v551_v24 = vsel %vm505_vm6, %v550_v18, %v546_v58  ;;  %v648_v50 = vrot.slane %v315_v27, %v1989_v25  ;;  %v2099_v63 = vsub.s32 %v521_v57, %v1978_v17 }
  0xb5   :  { %v297_v29 = vpop.xlane.xlu0 %296 }
  0xb6   :  { %v618_v36 = vrot.slane %v297_v29, %v2013_v54 }
  0xb7   :  { %v234_v43 = vpop.xlane.xlu1 %233 }
  0xb8   :  { %v619_v42 = vsel %vm491_vm4, %v618_v36, %v614_v8  ;;  %v511_v44 = vrot.slane %v234_v43, %v2059_v35 }
  0xb9   :  { %v318_v49 = vpop.xlane.xlu0 %317 }
  0xba   :  { %v652_v51 = vrot.slane %v318_v49, %v1992_v28  ;;  %v513_v53 = vsel %vm512_vm7, %v511_v44, %v506_v3 }
  0xbb   :  { %v279_v11 = vpop.xlane.xlu1 %278 }
  0xbc   :  { %v653_v55 = vsel %vm484_vm2, %v652_v51, %v648_v50  ;;  %v589_v12 = vrot.slane %v279_v11, %v2044_v14 }
  0xbd   :  { %v258_v13 = vpop.xlane.xlu0 %257 }
  0xbe   :  { %v555_v45 = vrot.slane %v258_v13, %v2059_v35  ;;  %v590_v30 = vsel %vm505_vm6, %v589_v12, %v585_v23 }
  0xbf   :  { %v321_v47 = vpop.xlane.xlu1 %320 }
  0xc0   :  { %v556_v31 = vsel %vm512_vm7, %v555_v45, %v551_v24  ;;  %v657_v48 = vrot.slane %v321_v47, %v2013_v54 }
  0xc1   :  { %v300_v20 = vpop.xlane.xlu0 %299 }
  0xc2   :  { %v623_v46 = vrot.slane %v300_v20, %v2034_v26  ;;  %v2076_v37 = vsel %vm491_vm4, %v657_v48, %v653_v55 }
  0xc3   :  { %v342_v5 = vpop.xlane.xlu1 %341 }
  0xc4   :  { %v624_v52 = vsel %vm498_vm5, %v623_v46, %v619_v42  ;;  %v691_v32 = vrot.slane %v342_v5, %v1992_v28 }
  0xc5   :  { %v339_v41 = vpop.xlane.xlu0 %338 }
  0xc6   :  { %v687_v15 = vrot.slane %v339_v41, %v1989_v25 }
  0xc7   :  { %v261_v22 = vpop.xlane.xlu1 %260 }
  0xc8   :  { %v2085_v21 = vsel %vm484_vm2, %v691_v32, %v687_v15  ;;  %v560_v38 = vrot.slane %v261_v22, %v2081_v40 }
  0xc9   :  { %v237_v60 = vpop.xlane.xlu0 %236 }
  0xca   :  { %v518_v0 = vrot.slane %v237_v60, %v2081_v40  ;;  %v561_v7 = vsel %vm519_vm8, %v560_v38, %v556_v31 }
  0xcb   :  { %v303_v4 = vpop.xlane.xlu1 %302 }
  0xcc   :  { %v520_v58 = vsel %vm519_vm8, %v518_v0, %v513_v53  ;;  %v628_v11 = vrot.slane %v303_v4, %v2044_v14 }
  0xcd   :  { %v282_v33 = vpop.xlane.xlu0 %281 }
  0xce   :  { %v594_v17 = vrot.slane %v282_v33, %v2059_v35  ;;  %v629_v31 = vsel %vm505_vm6, %v628_v11, %v624_v52 }
  0xcf   :  { %v2091_v19 = vpop.xlane.xlu1 %344 }
  0xd0   :  { %v595_v42 = vsel %vm512_vm7, %v594_v17, %v590_v30 }
  0xd1   :  { %v324_v56 = vpop.xlane.xlu0 %323 }
  0xd2   :  { %v662_v22 = vrot.slane %v324_v56, %v2034_v26 }
  0xd3   :  { %v2094_v61 = vpop.xlane.xlu1 %365 }
  0xd4   :  { %v730_v17 = vrot.slane %v2094_v61, %v1992_v28 }
  0xd5   :  { %v2096_v62 = vpop.xlane.xlu0 %362 }
  0xd7   :  { %v264_v1 = vpop.xlane.xlu1 %263 }
  0xd8   :  { %v565_v2 = vrot.slane %v264_v1, %v2099_v63 }
  0xd9   :  { %v240_v3 = vpop.xlane.xlu0 %239 }
  0xda   :  { %v525_v8 = vrot.slane %v240_v3, %v2099_v63  ;;  %v566_v9 = vsel %vm526_vm9, %v565_v2, %v561_v7  ;;  %v696_v2 = vrot.slane %v2091_v19, %v2013_v54  ;;  %v726_v19 = vrot.slane %v2096_v62, %v1989_v25 }
  0xdb   :  { %v306_v10 = vpop.xlane.xlu1 %305 }
  0xdc   :  { %v527_v16 = vsel %vm526_vm9, %v525_v8, %v520_v58  ;;  %v633_v13 = vrot.slane %v306_v10, %v2059_v35  ;;  %v663_v58 = vsel %vm498_vm5, %v662_v22, %v2076_v37  ;;  %v731_v62 = vsel %vm484_vm2, %v730_v17, %v726_v19  ;;  %v1090_v17 = vld [vmem:[%s2256_s3] ss:$0 sm:$0xff] }
  0xdd   :  { %v802_v59 = vsel %vm801_vm10, %v566_v9, %v527_v16  ;;  %v285_v6 = vpop.xlane.xlu0 %284 }
  0xde   :  { %v599_v29 = vrot.slane %v285_v6, %v2081_v40  ;;  %v634_v48 = vsel %vm512_vm7, %v633_v13, %v629_v31 }
  0xdf   :  { %v348_v18 = vpop.xlane.xlu1 %347 }
  0xe0   :  { %v600_v49 = vsel %vm519_vm8, %v599_v29, %v595_v42  ;;  %v701_v8 = vrot.slane %v348_v18, %v2034_v26 }
  0xe1   :  { %v327_v23 = vpop.xlane.xlu0 %326 }
  0xe2   :  { %v667_v52 = vrot.slane %v327_v23, %v2044_v14  ;;  %v697_v23 = vsel %vm491_vm4, %v696_v2, %v2085_v21 }
  0xe3   :  { %v2105_v24 = vpop.xlane.xlu1 %386  ;;  %v702_v29 = vsel %vm498_vm5, %v701_v8, %v697_v23  ;;  %v836_v8 = vld [vmem:[%s2255_s2 + $0x58] sm:$0xff] }
  0xe4   :  { %v668_v33 = vsel %vm505_vm6, %v667_v52, %v663_v58 }
  0xe5   :  { %v2108_v27 = vpop.xlane.xlu0 %368 }
  0xe6   :  { %v735_v42 = vrot.slane %v2108_v27, %v2013_v54 }
  0xe7   :  { %v288_v36 = vpop.xlane.xlu1 %287 }
  0xe8   :  { %v604_v43 = vrot.slane %v288_v36, %v2099_v63 }
  0xe9   :  { %v2113_v44 = vpop.xlane.xlu0 %389 }
  0xea   :  { %v605_v50 = vsel %vm526_vm9, %v604_v43, %v600_v49 }
  0xeb   :  { %v804_v51 = vsel %vm803_vm11, %v605_v50, %v802_v59  ;;  %v330_v53 = vpop.xlane.xlu1 %329 }
  0xec   :  { %v672_v0 = vrot.slane %v330_v53, %v2059_v35 }
  0xed   :  { %v309_v55 = vpop.xlane.xlu0 %308 }
  0xee   :  { %v638_v30 = vrot.slane %v309_v55, %v2081_v40  ;;  %v673_v1 = vsel %vm512_vm7, %v672_v0, %v668_v33  ;;  %v765_v55 = vrot.slane %v2105_v24, %v1989_v25  ;;  %v215_v0 = vld [vmem:[#allocation2] sm:$0xff] }
  0xef   :  { %v2118_v12 = vpop.xlane.xlu1 %371 }
  0xf0   :  { %v639_v46 = vsel %vm519_vm8, %v638_v30, %v634_v48  ;;  %v740_v21 = vrot.slane %v2118_v12, %v2034_v26  ;;  %v736_v30 = vsel %vm491_vm4, %v735_v42, %v731_v62 }
  0xf1   :  { %v351_v45 = vpop.xlane.xlu0 %350 }
  0xf2   :  { %v706_v37 = vrot.slane %v351_v45, %v2044_v14  ;;  %v741_v48 = vsel %vm498_vm5, %v740_v21, %v736_v30 }
  0xf3   :  { %v312_v47 = vpop.xlane.xlu1 %311 }
  0xf4   :  { %v643_v20 = vrot.slane %v312_v47, %v2099_v63  ;;  %v707_v43 = vsel %vm505_vm6, %v706_v37, %v702_v29  ;;  %v838_v37 = vld [vmem:[%s2255_s2 + $0x68] sm:$0xff] }
  0xf5   :  { %v2125_v39 = vpop.xlane.xlu0 %392 }
  0xf6   :  { %v644_v5 = vsel %vm526_vm9, %v643_v20, %v639_v46  ;;  %v774_v11 = vrot.slane %v2125_v39, %v2013_v54 }
  0xf7   :  { %v806_v32 = vsel %vm805_vm12, %v644_v5, %v804_v51  ;;  %v354_v41 = vpop.xlane.xlu1 %353  ;;  %v769_v51 = vrot.slane %v2113_v44, %v1992_v28 }
  0xf8   :  { %v711_v6 = vrot.slane %v354_v41, %v2059_v35 }
  0xf9   :  { %v333_v15 = vpop.xlane.xlu0 %332  ;;  %v770_v54 = vsel %vm484_vm2, %v769_v51, %v765_v55  ;;  %vm813_vm2 = vcmask 1047559  }
  0xfa   :  { %v677_v7 = vrot.slane %v333_v15, %v2081_v40  ;;  %v712_v50 = vsel %vm512_vm7, %v711_v6, %v707_v43  ;;  %v775_v46 = vsel %vm491_vm4, %v774_v11, %v770_v54  ;;  %v840_v6 = vld [vmem:[%s2255_s2 + $0x78] sm:$0xff] }
  0xfb   :  { %v396_v38 = vpop.xlane.xlu1 %395 }
  0xfc   :  { %v678_v3 = vsel %vm519_vm8, %v677_v7, %v673_v1  ;;  %v779_v31 = vrot.slane %v396_v38, %v2034_v26 }
  0xfd   :  { %v375_v60 = vpop.xlane.xlu0 %374 }
  0xfe   :  { %v745_v53 = vrot.slane %v375_v60, %v2044_v14 }
  0xff   :  { %v357_v4 = vpop.xlane.xlu1 %356 }
 0x100   :  { %v716_v18 = vrot.slane %v357_v4, %v2081_v40  ;;  %v746_v20 = vsel %vm505_vm6, %v745_v53, %v741_v48  ;;  %v1093_v48 = vld [vmem:[%s2256_s3 + $0x2] ss:$0 sm:$0xff] }
 0x101   :  { %v336_v57 = vpop.xlane.xlu0 %335 }
 0x102   :  { %v682_v56 = vrot.slane %v336_v57, %v2099_v63  ;;  %v717_v27 = vsel %vm519_vm8, %v716_v18, %v712_v50 }
 0x103   :  { %v399_v16 = vpop.xlane.xlu1 %398 }
 0x104   :  { %v683_v9 = vsel %vm526_vm9, %v682_v56, %v678_v3  ;;  %v784_v25 = vrot.slane %v399_v16, %v2044_v14  ;;  %v834_v56 = vld [vmem:[%s2255_s2 + $0x48] sm:$0xff]  ;;  %v835_v3 = vld [vmem:[%s2255_s2 + $0x50] sm:$0xff]  ;;  %v837_v16 = vld [vmem:[%s2255_s2 + $0x60] sm:$0xff] }
 0x105   :  { %v808_v10 = vsel %vm807_vm13, %v683_v9, %v806_v32  ;;  %v378_v59 = vpop.xlane.xlu0 %377  ;;  %v780_v32 = vsel %vm498_vm5, %v779_v31, %v775_v46  ;;  %v1172_v9 = vpack.c.bf16 %v836_v8, %v835_v3  ;;  %v1097_v8 = vld [vmem:[%s2256_s3 + $0x5] ss:$0 sm:$0xff] }
 0x106   :  { %v750_v12 = vrot.slane %v378_v59, %v2059_v35  ;;  %v785_v22 = vsel %vm505_vm6, %v784_v25, %v780_v32  ;;  %v839_v59 = vld [vmem:[%s2255_s2 + $0x70] sm:$0xff] }
 0x107   :  { %v381_v36 = vpop.xlane.xlu1 %380  ;;  %v1178_v23 = vpack.c.bf16 %v840_v6, %v839_v59 }
 0x108   :  { %v755_v28 = vrot.slane %v381_v36, %v2081_v40  ;;  %v751_v26 = vsel %vm512_vm7, %v750_v12, %v746_v20  ;;  %v1094_v20 = vld [vmem:[%s2256_s3 + $0x3] ss:$0 sm:$0xff] }
 0x109   :  { %v360_v49 = vpop.xlane.xlu0 %359 }
 0x10a   :  { %v721_v61 = vrot.slane %v360_v49, %v2099_v63  ;;  %v756_v41 = vsel %vm519_vm8, %v755_v28, %v751_v26 }
 0x10b   :  { %v384_v45 = vpop.xlane.xlu1 %383 }
 0x10c   :  { %v722_v13 = vsel %vm526_vm9, %v721_v61, %v717_v27  ;;  %v760_v24 = vrot.slane %v384_v45, %v2099_v63 }
 0x10d   :  { %v810_v44 = vsel %vm809_vm14, %v722_v13, %v808_v10  ;;  %v402_v47 = vpop.xlane.xlu0 %401  ;;  %v1175_v10 = vpack.c.bf16 %v838_v37, %v837_v16  ;;  %v1098_v37 = vld [vmem:[%s2256_s3 + $0x6] ss:$0 sm:$0xff] }
 0x10e   :  { %v789_v39 = vrot.slane %v402_v47, %v2059_v35  ;;  %v761_v38 = vsel %vm526_vm9, %v760_v24, %v756_v41 }
 0x10f   :  { %v408_v5 = vpop.xlane.xlu1 %407  ;;  %v812_v7 = vsel %vm811_vm15, %v761_v38, %v810_v44  ;;  %v1092_v44 = vld [vmem:[%s2256_s3 + $0x1] ss:$0 sm:$0xff] }
 0x110   :  { %v799_v14 = vrot.slane %v408_v5, %v2099_v63  ;;  %v790_v35 = vsel %vm512_vm7, %v789_v39, %v785_v22 }
 0x111   :  { %v405_v15 = vpop.xlane.xlu0 %404 }
 0x112   :  { %v794_v52 = vrot.slane %v405_v15, %v2081_v40  ;;  %v833_v40 = vld [vmem:[%s2255_s2 + $0x40] sm:$0xff] }
 0x113   :  { %v1169_v2 = vpack.c.bf16 %v834_v56, %v833_v40 }
 0x114   :  { %v795_v60 = vsel %vm519_vm8, %v794_v52, %v790_v35 }
 0x115   :  { %v800_v58 = vsel %vm526_vm9, %v799_v14, %v795_v60  ;;  %1170 = vmatpush3.bf16.msra.mxu1 %v1169_v2  ;;  %v1096_v2 = vld [vmem:[%s2256_s3 + $0x4] ss:$0 sm:$0xff] }
 0x116   :  { %v814_v4 = vsel %vm813_vm2, %v800_v58, %v812_v7  ;;  %1171 = vmatprep.subr.bf16.mxu1 %v1188_v34 }
 0x117   :  { %v816_v33 = vadd.f32 %v814_v4, %v215_v0 }
 0x119   :  { %818 = vst.msk [vmem:[#allocation2] sm:$0xff] %vm21_vm1, %v816_v33  ;;  %1173 = vmatpush3.bf16.msra.mxu1 %v1172_v9 }
 0x11a   :  { %1174 = vmatprep.subr.bf16.mxu1 %v1188_v34 }
 0x11d   :  { %1176 = vmatpush3.bf16.msra.mxu1 %v1175_v10 }
 0x11e   :  { %1177 = vmatprep.subr.bf16.mxu1 %v1188_v34 }
 0x120   :  { %v822_v63 = vld [vmem:[#allocation2] sm:$0xff] }
 0x121   :  { %v823_v57 = vand.u32 2147483647, %v822_v63  ;;  %1179 = vmatpush3.bf16.msra.mxu1 %v1178_v23  ;;  %v1099_v23 = vld [vmem:[%s2256_s3 + $0x7] ss:$0 sm:$0xff] }
 0x123   :  { %v824_v1 = vmul.f32 0.0625, %v823_v57 }
 0x125   :  { %1135 = vmatmul.mubr.msk.f32.vlgmr.msra.gmra.mrb[0].mxu0 %vm21_vm1, %v824_v1 }
 0x1f8   :  { %v922_v19 = vpop.f32.mrb[0].mxu0 }
 0x1f9   :  { %v923_v18 = vadd.f32 %v1090_v17, %v922_v19  ;;  %v1136_v29 = vpop.f32.mrb[1].mxu0 }
 0x1fb   :  { %v926_v36 = vsel %vm21_vm1, %v923_v18, 0.0 }
 0x1fc   :  { %v927_v34 = vrot.slane %v926_v36, 4 }
 0x1fe   :  { %v928_v42 = vadd.f32 %v927_v34, %v926_v36 }
 0x200   :  { %v929_v43 = vrot.slane %v928_v42, 2 }
 0x202   :  { %v930_v49 = vadd.f32 %v929_v43, %v928_v42 }
 0x204   :  { %v931_v21 = vrot.slane %v930_v49, 1 }
 0x206   :  { %v932_v50 = vadd.f32 %v931_v21, %v930_v49 }
 0x208   :  { %v934_v61 = vmul.f32 0.125, %v932_v50 }
 0x20a   :  { %v935_v62 = vsub.f32 %v923_v18, %v934_v61 }
 0x20c   :  { %v936_v51 = vmul.f32 %v935_v62, %v935_v62 }
 0x20e   :  { %v937_v53 = vsel %vm21_vm1, %v936_v51, 0.0 }
 0x20f   :  { %v938_v27 = vrot.slane %v937_v53, 4 }
 0x211   :  { %v939_v55 = vadd.f32 %v938_v27, %v937_v53 }
 0x213   :  { %v940_v11 = vrot.slane %v939_v55, 2 }
 0x215   :  { %v941_v12 = vadd.f32 %v940_v11, %v939_v55 }
 0x217   :  { %v942_v13 = vrot.slane %v941_v12, 1 }
 0x219   :  { %v943_v45 = vadd.f32 %v942_v13, %v941_v12 }
 0x21b   :  { %v944_v30 = vmul.f32 0.125, %v943_v45 }
 0x21d   :  { %v945_v31 = vadd.f32 1e-05, %v944_v30 }
 0x21f   :  { %1183 = vrsqrt.f32 %v945_v31 }
 0x229   :  { %v1184_v28 = vpop.eup %1183 }
 0x22a   :  { %v947_v47 = vmul.f32 %v1184_v28, %v935_v62 }
 0x22c   :  { %v952_v25 = vmul.f32 %v1092_v44, %v947_v47 }
 0x22e   :  { %v957_v24 = vadd.f32 %v1093_v48, %v952_v25 }
 0x230   :  { %v958_v54 = vmax.f32 %v957_v24, 0.0 }
 0x232   :  { %1154 = vmatmul.mubr.msk.f32.vlgmr.msra.gmra.mrb[0].mxu1 %vm21_vm1, %v958_v54  ;;  %vm1084_vm1 = vcmask 7168  }
 0x305   :  { %v1032_v39 = vpop.f32.mrb[0].mxu1 }
 0x306   :  { %v1033_v46 = vadd.f32 %v1094_v20, %v1032_v39  ;;  %v1155_v26 = vpop.f32.mrb[1].mxu1 }
 0x308   :  { %v1036_v5 = vsel %vm216_vm0, %v1033_v46, 0.0 }
 0x309   :  { %v1037_v32 = vrot.slane %v1036_v5, 4 }
 0x30b   :  { %v1038_v41 = vadd.f32 %v1037_v32, %v1036_v5 }
 0x30d   :  { %v1039_v15 = vrot.slane %v1038_v41, 2 }
 0x30f   :  { %v1040_v14 = vadd.f32 %v1039_v15, %v1038_v41 }
 0x311   :  { %v1041_v22 = vrot.slane %v1040_v14, 1 }
 0x313   :  { %v1042_v38 = vadd.f32 %v1041_v22, %v1040_v14 }
 0x315   :  { %v1043_v52 = vmul.f32 0.125, %v1042_v38 }
 0x317   :  { %v1044_v35 = vsub.f32 %v1033_v46, %v1043_v52 }
 0x319   :  { %v1045_v60 = vmul.f32 %v1044_v35, %v1044_v35 }
 0x31b   :  { %v1046_v0 = vsel %vm216_vm0, %v1045_v60, 0.0 }
 0x31c   :  { %v1047_v7 = vrot.slane %v1046_v0, 4 }
 0x31e   :  { %v1048_v58 = vadd.f32 %v1047_v7, %v1046_v0 }
 0x320   :  { %v1049_v4 = vrot.slane %v1048_v58, 2 }
 0x322   :  { %v1050_v33 = vadd.f32 %v1049_v4, %v1048_v58 }
 0x324   :  { %v1051_v63 = vrot.slane %v1050_v33, 1 }
 0x326   :  { %v1052_v57 = vadd.f32 %v1051_v63, %v1050_v33 }
 0x328   :  { %v1053_v1 = vmul.f32 0.125, %v1052_v57 }
 0x32a   :  { %v1054_v40 = vadd.f32 1e-05, %v1053_v1 }
 0x32c   :  { %1185 = vrsqrt.f32 %v1054_v40 }
 0x336   :  { %v1186_v56 = vpop.eup %1185 }
 0x337   :  { %v1056_v3 = vmul.f32 %v1186_v56, %v1044_v35 }
 0x339   :  { %v1061_v9 = vmul.f32 %v1096_v2, %v1056_v3 }
 0x33b   :  { %v1066_v16 = vadd.f32 %v1097_v8, %v1061_v9 }
 0x33d   :  { %v1067_v10 = vmax.f32 %v1066_v16, 0.0 }
 0x33f   :  { %v1072_v59 = vmul.f32 %v1098_v37, %v1067_v10 }
 0x341   :  { %v1073_v6 = vsel %vm216_vm0, %v1072_v59, 0.0 }
 0x342   :  { %1074 = vadd.xlane.f32.xlu0 %v1073_v6 }
 0x3cf   :  { %v1075_v17 = vpop.xlane.xlu0 %1074 }
 0x3d0   :  { %v1080_v19 = vadd.f32 %v1099_v23, %v1075_v17 }
 0x3d2   :  { %v1081_v18 = vmax.f32 %v1080_v19, 0.0 }
 0x3d4   :  { %v1082_v29 = vmax.f32 %v1081_v18, 0.05 }
 0x3d6   :  { %v1083_v36 = vmin.f32 %v1082_v29, 20.0 }
 0x3d8   :  { %1085 = vst.msk [vmem:[%s2257_s4] sm:$0xff] %vm1084_vm1, %v1083_v36 }

</bundles_post_ra>
